<compile_context>
chip_gen: v7x
topology: tpu7x:2x2x1
jax: 0.10.0
libtpu: 0.0.40
codegen_flags: <defaults>
</compile_context>

<pallas_src>
import functools

import numpy as np
import jax
import jax.numpy as jnp
from jax.experimental import pallas as pl
from jax.experimental.pallas import tpu as pltpu


def _round_up(n, m):
    return ((n + m - 1) // m) * m


def _mlp_loss_kernel(x_ref, w1_ref, b1_ref, w2_ref, b2_ref, o_ref):
    # Layer 1 on the MXU: bf16 inputs, f32 accumulation.
    h = jnp.dot(x_ref[...], w1_ref[...],
                preferred_element_type=jnp.float32)        # (TB, Hp) f32
    h = jnp.maximum(h + b1_ref[...], 0.0)                  # bias + relu in f32 (VPU)
    # Layer 2 is an N=1 matvec: VPU multiply + XLU lane-reduce, MXU stays free.
    y = jnp.sum(h * w2_ref[...], axis=-1, keepdims=True)   # (TB, 1) f32
    # Lane-dense store: broadcast result across 128 lanes (+ b2 on every lane).
    o_ref[...] = y + b2_ref[...]                           # (TB, 128) unmasked vst


@functools.partial(jax.jit, static_argnames=("max_tile_b",))
def mlp_loss_forward(x, w1, b1, w2, b2, *, max_tile_b=512):
    """Pallas forward: y = relu(x @ w1 + b1) @ w2 + b2, shapes (B,D) -> (B,1)."""
    B, D = x.shape
    H = w1.shape[1]
    Dp = _round_up(D, 128)                 # lane-pad features
    Hp = _round_up(H, 128)                 # lane-pad hidden width
    TB = min(max_tile_b, _round_up(B, 16))  # bf16 sublane tile = 16 rows
    Bp = _round_up(B, TB)
    grid_b = Bp // TB

    # Zero-pad + cast (cheap, tiny weights; folded under jit).  Zero padding is
    # exact: padded x cols / w1 rows contribute 0, padded hidden cols have
    # b1 = 0 and w2 = 0 so they never reach the output.
    xp = jnp.zeros((Bp, Dp), jnp.bfloat16).at[:B, :D].set(x.astype(jnp.bfloat16))
    w1p = jnp.zeros((Dp, Hp), jnp.bfloat16).at[:D, :H].set(w1.astype(jnp.bfloat16))
    b1p = jnp.zeros((1, Hp), jnp.float32).at[:, :H].set(b1.reshape(1, H).astype(jnp.float32))
    w2p = jnp.zeros((1, Hp), jnp.float32).at[:, :H].set(w2.reshape(1, H).astype(jnp.float32))
    b2p = jnp.broadcast_to(b2.reshape(1, 1).astype(jnp.float32), (1, 128))

    out = pl.pallas_call(
        _mlp_loss_kernel,
        out_shape=jax.ShapeDtypeStruct((Bp, 128), jnp.float32),
        grid=(grid_b,),
        in_specs=[
            pl.BlockSpec((TB, Dp), lambda i: (i, 0)),   # x tile, pipelined over batch
            pl.BlockSpec((Dp, Hp), lambda i: (0, 0)),   # W1 resident across grid
            pl.BlockSpec((1, Hp), lambda i: (0, 0)),    # b1 resident
            pl.BlockSpec((1, Hp), lambda i: (0, 0)),    # w2 (row) resident
            pl.BlockSpec((1, 128), lambda i: (0, 0)),   # b2 broadcast, resident
        ],
        out_specs=pl.BlockSpec((TB, 128), lambda i: (i, 0)),
        compiler_params=pltpu.CompilerParams(
            dimension_semantics=("parallel",)),          # megacore on v7x
    )(xp, w1p, b1p, w2p, b2p)

    return out[:B, :1]


class BaseLossModelPallas:
    """JAX/Pallas analogue of BaseLossModel with a concrete MLP forward."""

    def __init__(self, hidden_dim=32, device=None, parameter=None):
        self.device = device
        self.parameter = parameter
        # Deterministic parameter init (synthetic; no checkpoint load).
        k = jax.random.PRNGKey(42)
        k1, k2, k3, k4 = jax.random.split(k, 4)
        self.w1 = jax.random.normal(k1, (hidden_dim, hidden_dim), jnp.float32) * 0.1
        self.b1 = jax.random.normal(k2, (1, hidden_dim), jnp.float32) * 0.1
        self.w2 = jax.random.normal(k3, (hidden_dim, 1), jnp.float32) * 0.1
        self.b2 = jax.random.normal(k4, (1, 1), jnp.float32) * 0.1

    def generate_input(self, data):
        # TODO(synk): generate_input is abstract in the source module; pass-through here.
        return jnp.asarray(data, jnp.float32)

    def forward(self, xs):
        # mlp_loss_forward is jit-compiled once; repeated calls reuse the executable.
        return mlp_loss_forward(xs, self.w1, self.b1, self.w2, self.b2)

    def predict(self, state):
        # Matches torch: forward(generate_input(state)).squeeze(0).cpu().numpy()
        y = self.forward(self.generate_input(state))
        y = jax.block_until_ready(y)     # host handoff implied by .numpy() in torch
        if y.shape[0] == 1:              # torch .squeeze(0) is a no-op when dim0 != 1
            y = jnp.squeeze(y, axis=0)
        return np.asarray(y)


def _reference(x, w1, b1, w2, b2):
    return jnp.maximum(x @ w1 + b1, 0.0) @ w2 + b2


if __name__ == "__main__":
    batch, hidden = 2, 32
    key = jax.random.PRNGKey(0)
    x = jax.random.normal(key, (batch, hidden), jnp.float32)

    model = BaseLossModelPallas(hidden_dim=hidden)

    # Small-batch forward (sub-tile batch gets padded internally).
    y = jax.block_until_ready(model.forward(x))
    ref = _reference(x, model.w1, model.b1, model.w2, model.b2)
    assert y.shape == (batch, 1)
    # Layer-1 runs in bf16 (f32 accumulate) -> loose-ish tolerance vs f32 ref.
    assert jnp.allclose(y, ref, atol=5e-2, rtol=5e-2), "mismatch vs reference (small batch)"

    # Larger batch to exercise the pipelined multi-step grid.
    xb = jax.random.normal(jax.random.PRNGKey(1), (1000, hidden), jnp.float32)
    yb = jax.block_until_ready(model.forward(xb))
    refb = _reference(xb, model.w1, model.b1, model.w2, model.b2)
    assert yb.shape == (1000, 1)
    assert jnp.allclose(yb, refb, atol=5e-2, rtol=5e-2), "mismatch vs reference (large batch)"

    # predict path: squeeze(0) semantics.
    p1 = model.predict(x[:1])
    assert p1.shape == (1,)
    p2 = model.predict(x)          # B != 1 -> squeeze is a no-op, like torch
    assert p2.shape == (batch, 1)

    print("KERNEL_OK")
</pallas_src>

<mosaic_0001>
module attributes {stable_mosaic.version = 11 : i64} {
  func.func @_mlp_loss_kernel(%arg0: i32, %arg1: memref<16x128xbf16, #tpu.memory_space<vmem>>, %arg2: memref<128x128xbf16, #tpu.memory_space<vmem>>, %arg3: memref<1x128xf32, #tpu.memory_space<vmem>>, %arg4: memref<1x128xf32, #tpu.memory_space<vmem>>, %arg5: memref<1x128xf32, #tpu.memory_space<vmem>>, %arg6: memref<16x128xf32, #tpu.memory_space<vmem>>) attributes {dimension_semantics = [#tpu.dimension_semantics<parallel>], iteration_bounds = array<i64: 1>, scalar_prefetch = 0 : i64, scratch_operands = 0 : i64, tpu.core_type = #tpu.core_type<tc>, window_params = [{transform_indices = @transform_0, window_bounds = array<i64: 16, 128>}, {pipeline_mode = #tpu.pipeline_mode<synchronous>, transform_indices = @transform_1, window_bounds = array<i64: 128, 128>}, {pipeline_mode = #tpu.pipeline_mode<synchronous>, transform_indices = @transform_2, window_bounds = array<i64: 1, 128>}, {pipeline_mode = #tpu.pipeline_mode<synchronous>, transform_indices = @transform_3, window_bounds = array<i64: 1, 128>}, {pipeline_mode = #tpu.pipeline_mode<synchronous>, transform_indices = @transform_4, window_bounds = array<i64: 1, 128>}, {transform_indices = @transform_5, window_bounds = array<i64: 16, 128>}]} {
    %c0 = arith.constant 0 : index
    %c0_0 = arith.constant 0 : index
    %0 = vector.load %arg1[%c0, %c0_0] : memref<16x128xbf16, #tpu.memory_space<vmem>>, vector<16x128xbf16>
    %c0_1 = arith.constant 0 : index
    %c0_2 = arith.constant 0 : index
    %1 = vector.load %arg2[%c0_1, %c0_2] : memref<128x128xbf16, #tpu.memory_space<vmem>>, vector<128x128xbf16>
    %cst = arith.constant dense<0.000000e+00> : vector<16x128xf32>
    %2 = tpu.matmul %0, %1, %cst {dimension_numbers = #tpu.dot_dimension_numbers<[1], [0], [0], [1], [0, 0, 1, 1], [], []>} : vector<16x128xbf16>, vector<128x128xbf16>, vector<16x128xf32> -> vector<16x128xf32>
    %c0_3 = arith.constant 0 : index
    %c0_4 = arith.constant 0 : index
    %3 = vector.load %arg3[%c0_3, %c0_4] : memref<1x128xf32, #tpu.memory_space<vmem>>, vector<1x128xf32>
    %4 = vector.broadcast %3 : vector<1x128xf32> to vector<16x128xf32>
    %5 = arith.addf %2, %4 : vector<16x128xf32>
    %cst_5 = arith.constant 0.000000e+00 : f32
    %6 = vector.broadcast %cst_5 : f32 to vector<16x128xf32>
    %7 = arith.maximumf %5, %6 : vector<16x128xf32>
    %c0_6 = arith.constant 0 : index
    %c0_7 = arith.constant 0 : index
    %8 = vector.load %arg4[%c0_6, %c0_7] : memref<1x128xf32, #tpu.memory_space<vmem>>, vector<1x128xf32>
    %9 = vector.broadcast %8 : vector<1x128xf32> to vector<16x128xf32>
    %10 = arith.mulf %7, %9 : vector<16x128xf32>
    %cst_8 = arith.constant dense<0.000000e+00> : vector<16xf32>
    %11 = vector.multi_reduction <add>, %10, %cst_8 [1] : vector<16x128xf32> to vector<16xf32>
    %12 = vector.shape_cast %11 : vector<16xf32> to vector<16x1xf32>
    %c0_9 = arith.constant 0 : index
    %c0_10 = arith.constant 0 : index
    %13 = vector.load %arg5[%c0_9, %c0_10] : memref<1x128xf32, #tpu.memory_space<vmem>>, vector<1x128xf32>
    %14 = vector.broadcast %12 : vector<16x1xf32> to vector<16x128xf32>
    %15 = vector.broadcast %13 : vector<1x128xf32> to vector<16x128xf32>
    %16 = arith.addf %14, %15 : vector<16x128xf32>
    %c0_11 = arith.constant 0 : index
    %c0_12 = arith.constant 0 : index
    %17 = vector.load %arg6[%c0_11, %c0_12] : memref<16x128xf32, #tpu.memory_space<vmem>>, vector<16x128xf32>
    tpu.vector_store %arg6[%c0_11, %c0_12], %16 {strides = array<i32>} : memref<16x128xf32, #tpu.memory_space<vmem>>, vector<16x128xf32>,
    return
  }
  func.func @transform_0(%arg0: i32) -> (i32, i32) {
    %c0_i32 = arith.constant 0 : i32
    %c0_i32_0 = arith.constant 0 : i32
    return %arg0, %c0_i32 : i32, i32
  }
  func.func @transform_1(%arg0: i32) -> (i32, i32) {
    %c0_i32 = arith.constant 0 : i32
    %c0_i32_0 = arith.constant 0 : i32
    %c0_i32_1 = arith.constant 0 : i32
    return %c0_i32, %c0_i32_0 : i32, i32
  }
  func.func @transform_2(%arg0: i32) -> (i32, i32) {
    %c0_i32 = arith.constant 0 : i32
    %c0_i32_0 = arith.constant 0 : i32
    %c0_i32_1 = arith.constant 0 : i32
    return %c0_i32, %c0_i32_0 : i32, i32
  }
  func.func @transform_3(%arg0: i32) -> (i32, i32) {
    %c0_i32 = arith.constant 0 : i32
    %c0_i32_0 = arith.constant 0 : i32
    %c0_i32_1 = arith.constant 0 : i32
    return %c0_i32, %c0_i32_0 : i32, i32
  }
  func.func @transform_4(%arg0: i32) -> (i32, i32) {
    %c0_i32 = arith.constant 0 : i32
    %c0_i32_0 = arith.constant 0 : i32
    %c0_i32_1 = arith.constant 0 : i32
    return %c0_i32, %c0_i32_0 : i32, i32
  }
  func.func @transform_5(%arg0: i32) -> (i32, i32) {
    %c0_i32 = arith.constant 0 : i32
    %c0_i32_0 = arith.constant 0 : i32
    return %arg0, %c0_i32 : i32, i32
  }
}

</mosaic_0001>

<bundles_post_ra>
// kernel: mlp_loss_forward.1
= control target key start
LH: loop header
LB: loop body
LE: loop exit
PB: predicated region body
PF: predicated region fallthrough
CT: control target
= control target key end

     0   :  { %v223_v0 = vmov 0.0   ;;  %vm224_vm0 = vmmov 0   ;;  %s297_s1 = inlined_call_operand.vmem [shape: bf16[128,128], index: 1, kind: input, shape index: {}]   ;;  %s298_s0 = inlined_call_operand.vmem [shape: bf16[16,128], index: 0, kind: input, shape index: {}]   ;;  %s299_s2 = inlined_call_operand.vmem [shape: f32[1,128], index: 2, kind: input, shape index: {}]   ;;  %s300_s3 = inlined_call_operand.vmem [shape: f32[1,128], index: 3, kind: input, shape index: {}]   ;;  %s301_s4 = inlined_call_operand.vmem [shape: f32[1,128], index: 4, kind: input, shape index: {}]   ;;  %s302_s5 = inlined_call_operand.vmem [shape: f32[16,128], index: 5, kind: output, shape index: {}]  }
   0x1   :  { %192 = vmatprep.subr.bf16.mxu0 %v223_v0  ;;  %v214_v1 = vld [vmem:[%s297_s1] sm:$0xff]   ;;  %208 = vmatprep.mubr.msk.bf16.mxu0 %vm224_vm0, %v223_v0  ;;  %v215_v2 = vld [vmem:[%s297_s1 + $0x8] sm:$0xff]   ;;  %v216_v3 = vld [vmem:[%s297_s1 + $0x10] sm:$0xff]  }
   0x2   :  { %193 = vmatpush3.bf16.msra.mxu0 %v214_v1  ;;  %v217_v4 = vld [vmem:[%s297_s1 + $0x18] sm:$0xff]   ;;  %v218_v5 = vld [vmem:[%s297_s1 + $0x20] sm:$0xff]   ;;  %v219_v6 = vld [vmem:[%s297_s1 + $0x28] sm:$0xff]  }
   0x3   :  { %194 = vmatprep.subr.bf16.mxu0 %v223_v0  ;;  %v220_v7 = vld [vmem:[%s297_s1 + $0x30] sm:$0xff]   ;;  %v221_v8 = vld [vmem:[%s297_s1 + $0x38] sm:$0xff]   ;;  %v222_v9 = vld [vmem:[%s298_s0] sm:$0xff]  }
   0x4   :  { %v171_v10 = vld [vmem:[%s299_s2] ss:$0 sm:$0xff] }
   0x5   :  { %v181_v15 = vld [vmem:[%s300_s3] ss:$0 sm:$0xff] }
   0x6   :  { %195 = vmatpush3.bf16.msra.mxu0 %v215_v2  ;;  %v182_v22 = vld [vmem:[%s301_s4] ss:$0 sm:$0xff] }
   0x7   :  { %196 = vmatprep.subr.bf16.mxu0 %v223_v0 }
   0xa   :  { %197 = vmatpush3.bf16.msra.mxu0 %v216_v3 }
   0xb   :  { %198 = vmatprep.subr.bf16.mxu0 %v223_v0 }
   0xe   :  { %199 = vmatpush3.bf16.msra.mxu0 %v217_v4 }
   0xf   :  { %200 = vmatprep.subr.bf16.mxu0 %v223_v0 }
  0x12   :  { %201 = vmatpush3.bf16.msra.mxu0 %v218_v5 }
  0x13   :  { %202 = vmatprep.subr.bf16.mxu0 %v223_v0 }
  0x16   :  { %203 = vmatpush3.bf16.msra.mxu0 %v219_v6 }
  0x17   :  { %204 = vmatprep.subr.bf16.mxu0 %v223_v0 }
  0x1a   :  { %205 = vmatpush3.bf16.msra.mxu0 %v220_v7 }
  0x1b   :  { %206 = vmatprep.subr.bf16.mxu0 %v223_v0 }
  0x1e   :  { %207 = vmatpush3.bf16.msra.mxu0 %v221_v8 }
  0x21   :  { %209 = vmatmul.mubr.bf16.vlgmr.msra.gmra.mrb[0].mxu0 %v222_v9 }
  0xf4   :  { %v134_v11 = vpop.f32.mrb[0].mxu0 }
  0xf5   :  { %v135_v12 = vadd.f32 %v171_v10, %v134_v11  ;;  %v210_v13 = vpop.f32.mrb[1].mxu0 }
  0xf6   :  { %v137_v14 = vpop.f32.mrb[2].mxu0 }
  0xf7   :  { %v141_v16 = vmax.f32 %v135_v12, 0.0  ;;  %v138_v17 = vadd.f32 %v171_v10, %v137_v14  ;;  %v211_v18 = vpop.f32.mrb[3].mxu0 }
  0xf9   :  { %v142_v19 = vmax.f32 %v138_v17, 0.0  ;;  %v150_v20 = vmul.f32 %v181_v15, %v141_v16 }
  0xfb   :  { %152 = vadd.xlane.f32.xlu0 %v150_v20  ;;  %v151_v21 = vmul.f32 %v181_v15, %v142_v19 }
  0xff   :  { %154 = vadd.xlane.f32.xlu0 %v151_v21 }
 0x188   :  { %v153_v23 = vpop.xlane.xlu0 %152 }
 0x189   :  { %v163_v24 = vadd.f32 %v182_v22, %v153_v23 }
 0x18b   :  { %165 = vst [vmem:[%s302_s5] sm:$0xff] %v163_v24 }
 0x18c   :  { %v155_v25 = vpop.xlane.xlu0 %154 }
 0x18d   :  { %v164_v26 = vadd.f32 %v182_v22, %v155_v25 }
 0x18f   :  { %166 = vst [vmem:[%s302_s5 + $0x8] sm:$0xff] %v164_v26 }

</bundles_post_ra>
